<compile_context>
chip_gen: v5e
topology: v5e:2x2
jax: 0.10.0
libtpu: 0.0.40
codegen_flags: <defaults>
</compile_context>

<pallas_src>
import functools
import math

import jax
import jax.numpy as jnp
from jax import lax
from jax.experimental import pallas as pl
from jax.experimental.pallas import tpu as pltpu


# ----------------------------- kernel helpers -----------------------------

def _ln_f32(x, g, b, eps=1e-5):
    """LayerNorm in f32 on a (rows, D) tile; g/b are (1, D)."""
    mu = jnp.mean(x, axis=-1, keepdims=True)
    var = jnp.mean(jnp.square(x - mu), axis=-1, keepdims=True)
    return (x - mu) * lax.rsqrt(var + eps) * g + b


# ----------------------------- Pallas kernels -----------------------------

def _encoder_layer_kernel(x_ref, mask_ref,
                          ln1_g_ref, ln1_b_ref, wqkv_ref, bqkv_ref,
                          wo_ref, bo_ref,
                          ln2_g_ref, ln2_b_ref, w1_ref, b1_ref, w2_ref, b2_ref,
                          o_ref, *, nhead, scale):
    """One full pre-norm encoder layer for a single batch element.

    Block shapes:
      x_ref    (1, S, D)  bf16 activations
      mask_ref (1, 1, S)  f32 additive key-padding mask
      weights  full matrices (resident in VMEM across the batch grid)
    """
    x = x_ref[0].astype(jnp.float32)                       # (S, D) f32
    mask = mask_ref[0]                                     # (1, S) f32

    # ---- self-attention sublayer:  x = x + OutProj(MHA(LN1(x))) ----
    h1 = _ln_f32(x, ln1_g_ref[...], ln1_b_ref[...])
    qkv = jnp.dot(h1.astype(jnp.bfloat16), wqkv_ref[...],
                  preferred_element_type=jnp.float32) + bqkv_ref[...]
    qkv = qkv.astype(jnp.bfloat16)                         # (S, 3D)

    D3 = qkv.shape[-1]
    D = D3 // 3
    Dh = D // nhead

    heads = []
    for h in range(nhead):
        q = qkv[:, h * Dh:(h + 1) * Dh]                    # (S, Dh) bf16
        k = qkv[:, D + h * Dh:D + (h + 1) * Dh]            # (S, Dh) bf16
        v = qkv[:, 2 * D + h * Dh:2 * D + (h + 1) * Dh]    # (S, Dh) bf16
        # q @ k^T without an explicit transpose (contract last dims).
        s = lax.dot_general(q, k, (((1,), (1,)), ((), ())),
                            preferred_element_type=jnp.float32)
        s = s * scale + mask                               # f32 softmax path
        s = s - jnp.max(s, axis=-1, keepdims=True)
        p = jnp.exp(s)
        p = p * pl.reciprocal(jnp.sum(p, axis=-1, keepdims=True), approx=True)
        heads.append(jnp.dot(p.astype(jnp.bfloat16), v,
                             preferred_element_type=jnp.float32))
    ctx = jnp.concatenate(heads, axis=-1)                  # (S, D) f32

    attn = jnp.dot(ctx.astype(jnp.bfloat16), wo_ref[...],
                   preferred_element_type=jnp.float32) + bo_ref[...]
    x = x + attn                                           # residual add 1 (f32)

    # ---- FFN sublayer:  x = x + W2 @ ReLU(W1 @ LN2(x)) ----
    h2 = _ln_f32(x, ln2_g_ref[...], ln2_b_ref[...])
    ff = jnp.dot(h2.astype(jnp.bfloat16), w1_ref[...],
                 preferred_element_type=jnp.float32) + b1_ref[...]
    ff = jnp.maximum(ff, 0.0)                              # ReLU in f32
    y = jnp.dot(ff.astype(jnp.bfloat16), w2_ref[...],
                preferred_element_type=jnp.float32) + b2_ref[...]

    o_ref[0] = (x + y).astype(o_ref.dtype)                 # residual add 2


def _layernorm_kernel(x_ref, g_ref, b_ref, o_ref):
    x = x_ref[...].astype(jnp.float32)
    o_ref[...] = _ln_f32(x, g_ref[...], b_ref[...]).astype(o_ref.dtype)


# ----------------------------- kernel wrappers -----------------------------

_PARALLEL_1D = pltpu.CompilerParams(dimension_semantics=("parallel",))


def encoder_layer(x, add_mask, layer, nhead):
    """x: (B, S, D) bf16; add_mask: (B, 1, S) f32. Returns (B, S, D) bf16."""
    B, S, D = x.shape
    D3 = layer["in_proj_w"].shape[1]
    F = layer["w1"].shape[1]
    scale = 1.0 / math.sqrt(D // nhead)

    const = lambda b: (0, 0)  # weight blocks: same block every grid step -> resident
    return pl.pallas_call(
        functools.partial(_encoder_layer_kernel, nhead=nhead, scale=scale),
        out_shape=jax.ShapeDtypeStruct((B, S, D), jnp.bfloat16),
        grid=(B,),
        in_specs=[
            pl.BlockSpec((1, S, D), lambda b: (b, 0, 0)),   # x
            pl.BlockSpec((1, 1, S), lambda b: (b, 0, 0)),   # additive mask
            pl.BlockSpec((1, D), const),                    # ln1 gamma
            pl.BlockSpec((1, D), const),                    # ln1 beta
            pl.BlockSpec((D, D3), const),                   # in_proj W (QKV)
            pl.BlockSpec((1, D3), const),                   # in_proj b
            pl.BlockSpec((D, D), const),                    # out_proj W
            pl.BlockSpec((1, D), const),                    # out_proj b
            pl.BlockSpec((1, D), const),                    # ln2 gamma
            pl.BlockSpec((1, D), const),                    # ln2 beta
            pl.BlockSpec((D, F), const),                    # W1
            pl.BlockSpec((1, F), const),                    # b1
            pl.BlockSpec((F, D), const),                    # W2
            pl.BlockSpec((1, D), const),                    # b2
        ],
        out_specs=pl.BlockSpec((1, S, D), lambda b: (b, 0, 0)),
        compiler_params=_PARALLEL_1D,
    )(x, add_mask,
      layer["ln1_g"], layer["ln1_b"], layer["in_proj_w"], layer["in_proj_b"],
      layer["out_proj_w"], layer["out_proj_b"],
      layer["ln2_g"], layer["ln2_b"], layer["w1"], layer["b1"],
      layer["w2"], layer["b2"])


def _row_tile(m, target=256):
    """Largest row tile <= target that divides m (multiple of 8 when tiled)."""
    if m <= target:
        return m
    for tm in range(target, 7, -8):
        if m % tm == 0:
            return tm
    return m


def layernorm(x, g, b, out_dtype=jnp.float32):
    M, D = x.shape
    TM = _row_tile(M)
    return pl.pallas_call(
        _layernorm_kernel,
        out_shape=jax.ShapeDtypeStruct((M, D), out_dtype),
        grid=(M // TM,),
        in_specs=[
            pl.BlockSpec((TM, D), lambda i: (i, 0)),
            pl.BlockSpec((1, D), lambda i: (0, 0)),
            pl.BlockSpec((1, D), lambda i: (0, 0)),
        ],
        out_specs=pl.BlockSpec((TM, D), lambda i: (i, 0)),
        compiler_params=_PARALLEL_1D,
    )(x, g, b)


# ----------------------------- parameter setup -----------------------------

def make_positional_encoding(max_len, dim):
    position = jnp.arange(max_len, dtype=jnp.float32)[:, None]
    div_term = jnp.exp(jnp.arange(0, dim, 2, dtype=jnp.float32)
                       * -(math.log(10000.0) / dim))
    pe = jnp.zeros((max_len, dim), jnp.float32)
    pe = pe.at[:, 0::2].set(jnp.sin(position * div_term))
    pe = pe.at[:, 1::2].set(jnp.cos(position * div_term))
    return pe[:, None, :]  # (max_len, 1, dim)


def init_params(key, vocab_size, d_model, nhead, num_layers):
    d_ff = 4 * d_model
    keys = jax.random.split(key, 1 + num_layers)
    emb = jax.random.normal(keys[0], (vocab_size, d_model), jnp.float32) * 0.02
    layers = []
    for li in range(num_layers):
        k = jax.random.split(keys[1 + li], 4)
        layers.append(dict(
            # LayerNorm params / biases kept 2-D (1, N) so they DMA as lane rows.
            ln1_g=jnp.ones((1, d_model), jnp.float32),
            ln1_b=jnp.zeros((1, d_model), jnp.float32),
            ln2_g=jnp.ones((1, d_model), jnp.float32),
            ln2_b=jnp.zeros((1, d_model), jnp.float32),
            # matmul weights stored (in, out) in bf16 (MXU-native); biases f32
            in_proj_w=(jax.random.normal(k[0], (d_model, 3 * d_model)) * 0.02
                       ).astype(jnp.bfloat16),
            in_proj_b=jnp.zeros((1, 3 * d_model), jnp.float32),
            out_proj_w=(jax.random.normal(k[1], (d_model, d_model)) * 0.02
                        ).astype(jnp.bfloat16),
            out_proj_b=jnp.zeros((1, d_model), jnp.float32),
            w1=(jax.random.normal(k[2], (d_model, d_ff)) * 0.02).astype(jnp.bfloat16),
            b1=jnp.zeros((1, d_ff), jnp.float32),
            w2=(jax.random.normal(k[3], (d_ff, d_model)) * 0.02).astype(jnp.bfloat16),
            b2=jnp.zeros((1, d_model), jnp.float32),
        ))
    return dict(emb=emb, layers=layers,
                final_g=jnp.ones((1, d_model), jnp.float32),
                final_b=jnp.zeros((1, d_model), jnp.float32))


# ----------------------------- encoder forward -----------------------------

def encoder_forward(token_ids, key_padding_mask, params, pe, nhead):
    """token_ids: (S, B) int32; key_padding_mask: (B, S) bool (True = pad)."""
    S, B = token_ids.shape
    D = params["emb"].shape[1]

    # Embedding + positional encoding (plain-JAX glue, tiny gather).
    x = params["emb"][token_ids] * math.sqrt(D) + pe[:S]        # (S, B, D) f32
    # Single transpose for the whole stack: keep activations batch-major
    # (B, S, D) so each grid step sees a contiguous batch element.
    x = jnp.transpose(x, (1, 0, 2)).astype(jnp.bfloat16)        # (B, S, D) bf16

    # Additive key-padding mask in f32 (softmax runs in f32).
    add_mask = jnp.where(key_padding_mask, -1e9, 0.0).astype(jnp.float32)
    add_mask = add_mask.reshape(B, 1, S)

    # One fused Pallas kernel per encoder layer.
    for layer in params["layers"]:
        x = encoder_layer(x, add_mask, layer, nhead)

    # Final nn.LayerNorm(d_model) of TransformerEncoder.
    x = layernorm(x.reshape(B * S, D), params["final_g"], params["final_b"])
    return jnp.transpose(x.reshape(B, S, D), (1, 0, 2))          # (S, B, D) f32


# ----------------------------- main -----------------------------

if __name__ == "__main__":
    S, B = 8, 2              # max_seq_len = 8, batch = 2
    D, NHEAD, NLAYERS = 32, 4, 2
    VOCAB = 50

    key = jax.random.PRNGKey(0)
    k_param, k_tok = jax.random.split(key)

    params = init_params(k_param, VOCAB, D, NHEAD, NLAYERS)
    pe = make_positional_encoding(5000, D)

    token_ids = jax.random.randint(k_tok, (S, B), 0, VOCAB, dtype=jnp.int32)
    # src_key_padding_mask: True means padded position (batch 1 has 2 pad tokens)
    key_padding_mask = jnp.zeros((B, S), dtype=bool).at[1, 6:].set(True)

    fwd = jax.jit(encoder_forward, static_argnames=("nhead",))
    out = fwd(token_ids, key_padding_mask, params, pe, nhead=NHEAD)
    out = jax.block_until_ready(out)

    assert out.shape == (S, B, D)
    assert bool(jnp.all(jnp.isfinite(out)))
    print("KERNEL_OK")
</pallas_src>

<mosaic_0001>
module attributes {stable_mosaic.version = 11 : i64} {
  func.func @_layernorm_kernel(%arg0: i32, %arg1: memref<16x32xbf16, #tpu.memory_space<vmem>>, %arg2: memref<1x32xf32, #tpu.memory_space<vmem>>, %arg3: memref<1x32xf32, #tpu.memory_space<vmem>>, %arg4: memref<16x32xf32, #tpu.memory_space<vmem>>) attributes {dimension_semantics = [#tpu.dimension_semantics<parallel>], iteration_bounds = array<i64: 1>, scalar_prefetch = 0 : i64, scratch_operands = 0 : i64, tpu.core_type = #tpu.core_type<tc>, window_params = [{transform_indices = @transform_0, window_bounds = array<i64: 16, 32>}, {pipeline_mode = #tpu.pipeline_mode<synchronous>, transform_indices = @transform_1, window_bounds = array<i64: 1, 32>}, {pipeline_mode = #tpu.pipeline_mode<synchronous>, transform_indices = @transform_2, window_bounds = array<i64: 1, 32>}, {transform_indices = @transform_3, window_bounds = array<i64: 16, 32>}]} {
    %c0 = arith.constant 0 : index
    %c0_0 = arith.constant 0 : index
    %0 = vector.load %arg1[%c0, %c0_0] : memref<16x32xbf16, #tpu.memory_space<vmem>>, vector<16x32xbf16>
    %1 = arith.extf %0 : vector<16x32xbf16> to vector<16x32xf32>
    %c0_1 = arith.constant 0 : index
    %c0_2 = arith.constant 0 : index
    %2 = vector.load %arg2[%c0_1, %c0_2] : memref<1x32xf32, #tpu.memory_space<vmem>>, vector<1x32xf32>
    %c0_3 = arith.constant 0 : index
    %c0_4 = arith.constant 0 : index
    %3 = vector.load %arg3[%c0_3, %c0_4] : memref<1x32xf32, #tpu.memory_space<vmem>>, vector<1x32xf32>
    %cst = arith.constant dense<0.000000e+00> : vector<16xf32>
    %4 = vector.multi_reduction <add>, %1, %cst [1] : vector<16x32xf32> to vector<16xf32>
    %5 = vector.shape_cast %4 : vector<16xf32> to vector<16x1xf32>
    %cst_5 = arith.constant 3.200000e+01 : f32
    %6 = vector.broadcast %cst_5 : f32 to vector<16x1xf32>
    %7 = arith.divf %5, %6 : vector<16x1xf32>
    %8 = vector.broadcast %7 : vector<16x1xf32> to vector<16x32xf32>
    %9 = arith.subf %1, %8 : vector<16x32xf32>
    %10 = arith.mulf %9, %9 : vector<16x32xf32>
    %cst_6 = arith.constant dense<0.000000e+00> : vector<16xf32>
    %11 = vector.multi_reduction <add>, %10, %cst_6 [1] : vector<16x32xf32> to vector<16xf32>
    %12 = vector.shape_cast %11 : vector<16xf32> to vector<16x1xf32>
    %cst_7 = arith.constant 3.200000e+01 : f32
    %13 = vector.broadcast %cst_7 : f32 to vector<16x1xf32>
    %14 = arith.divf %12, %13 : vector<16x1xf32>
    %15 = vector.broadcast %7 : vector<16x1xf32> to vector<16x32xf32>
    %16 = arith.subf %1, %15 : vector<16x32xf32>
    %cst_8 = arith.constant 9.99999974E-6 : f32
    %17 = vector.broadcast %cst_8 : f32 to vector<16x1xf32>
    %18 = arith.addf %14, %17 : vector<16x1xf32>
    %19 = math.rsqrt %18 : vector<16x1xf32>
    %20 = vector.broadcast %19 : vector<16x1xf32> to vector<16x32xf32>
    %21 = arith.mulf %16, %20 : vector<16x32xf32>
    %22 = vector.broadcast %2 : vector<1x32xf32> to vector<16x32xf32>
    %23 = arith.mulf %21, %22 : vector<16x32xf32>
    %24 = vector.broadcast %3 : vector<1x32xf32> to vector<16x32xf32>
    %25 = arith.addf %23, %24 : vector<16x32xf32>
    %c0_9 = arith.constant 0 : index
    %c0_10 = arith.constant 0 : index
    %26 = vector.load %arg4[%c0_9, %c0_10] : memref<16x32xf32, #tpu.memory_space<vmem>>, vector<16x32xf32>
    tpu.vector_store %arg4[%c0_9, %c0_10], %25 {strides = array<i32>} : memref<16x32xf32, #tpu.memory_space<vmem>>, vector<16x32xf32>,
    return
  }
  func.func @transform_0(%arg0: i32) -> (i32, i32) {
    %c0_i32 = arith.constant 0 : i32
    %c0_i32_0 = arith.constant 0 : i32
    return %arg0, %c0_i32 : i32, i32
  }
  func.func @transform_1(%arg0: i32) -> (i32, i32) {
    %c0_i32 = arith.constant 0 : i32
    %c0_i32_0 = arith.constant 0 : i32
    %c0_i32_1 = arith.constant 0 : i32
    return %c0_i32, %c0_i32_0 : i32, i32
  }
  func.func @transform_2(%arg0: i32) -> (i32, i32) {
    %c0_i32 = arith.constant 0 : i32
    %c0_i32_0 = arith.constant 0 : i32
    %c0_i32_1 = arith.constant 0 : i32
    return %c0_i32, %c0_i32_0 : i32, i32
  }
  func.func @transform_3(%arg0: i32) -> (i32, i32) {
    %c0_i32 = arith.constant 0 : i32
    %c0_i32_0 = arith.constant 0 : i32
    return %arg0, %c0_i32 : i32, i32
  }
}

module attributes {stable_mosaic.version = 11 : i64} {
  func.func @_encoder_layer_kernel(%arg0: i32, %arg1: memref<1x8x32xbf16, #tpu.memory_space<vmem>>, %arg2: memref<1x1x8xf32, #tpu.memory_space<vmem>>, %arg3: memref<1x32xf32, #tpu.memory_space<vmem>>, %arg4: memref<1x32xf32, #tpu.memory_space<vmem>>, %arg5: memref<32x96xbf16, #tpu.memory_space<vmem>>, %arg6: memref<1x96xf32, #tpu.memory_space<vmem>>, %arg7: memref<32x32xbf16, #tpu.memory_space<vmem>>, %arg8: memref<1x32xf32, #tpu.memory_space<vmem>>, %arg9: memref<1x32xf32, #tpu.memory_space<vmem>>, %arg10: memref<1x32xf32, #tpu.memory_space<vmem>>, %arg11: memref<32x128xbf16, #tpu.memory_space<vmem>>, %arg12: memref<1x128xf32, #tpu.memory_space<vmem>>, %arg13: memref<128x32xbf16, #tpu.memory_space<vmem>>, %arg14: memref<1x32xf32, #tpu.memory_space<vmem>>, %arg15: memref<1x8x32xbf16, #tpu.memory_space<vmem>>) attributes {dimension_semantics = [#tpu.dimension_semantics<parallel>], iteration_bounds = array<i64: 2>, scalar_prefetch = 0 : i64, scratch_operands = 0 : i64, tpu.core_type = #tpu.core_type<tc>, window_params = [{transform_indices = @transform_0, window_bounds = array<i64: 1, 8, 32>}, {transform_indices = @transform_1, window_bounds = array<i64: 1, 1, 8>}, {pipeline_mode = #tpu.pipeline_mode<synchronous>, transform_indices = @transform_2, window_bounds = array<i64: 1, 32>}, {pipeline_mode = #tpu.pipeline_mode<synchronous>, transform_indices = @transform_3, window_bounds = array<i64: 1, 32>}, {pipeline_mode = #tpu.pipeline_mode<synchronous>, transform_indices = @transform_4, window_bounds = array<i64: 32, 96>}, {pipeline_mode = #tpu.pipeline_mode<synchronous>, transform_indices = @transform_5, window_bounds = array<i64: 1, 96>}, {pipeline_mode = #tpu.pipeline_mode<synchronous>, transform_indices = @transform_6, window_bounds = array<i64: 32, 32>}, {pipeline_mode = #tpu.pipeline_mode<synchronous>, transform_indices = @transform_7, window_bounds = array<i64: 1, 32>}, {pipeline_mode = #tpu.pipeline_mode<synchronous>, transform_indices = @transform_8, window_bounds = array<i64: 1, 32>}, {pipeline_mode = #tpu.pipeline_mode<synchronous>, transform_indices = @transform_9, window_bounds = array<i64: 1, 32>}, {pipeline_mode = #tpu.pipeline_mode<synchronous>, transform_indices = @transform_10, window_bounds = array<i64: 32, 128>}, {pipeline_mode = #tpu.pipeline_mode<synchronous>, transform_indices = @transform_11, window_bounds = array<i64: 1, 128>}, {pipeline_mode = #tpu.pipeline_mode<synchronous>, transform_indices = @transform_12, window_bounds = array<i64: 128, 32>}, {pipeline_mode = #tpu.pipeline_mode<synchronous>, transform_indices = @transform_13, window_bounds = array<i64: 1, 32>}, {transform_indices = @transform_14, window_bounds = array<i64: 1, 8, 32>}]} {
    %c0 = arith.constant 0 : index
    %c0_0 = arith.constant 0 : index
    %c0_1 = arith.constant 0 : index
    %0 = vector.load %arg1[%c0, %c0_0, %c0_1] : memref<1x8x32xbf16, #tpu.memory_space<vmem>>, vector<1x8x32xbf16>
    %1 = vector.shape_cast %0 : vector<1x8x32xbf16> to vector<8x32xbf16>
    %2 = arith.extf %1 : vector<8x32xbf16> to vector<8x32xf32>
    %c0_2 = arith.constant 0 : index
    %c0_3 = arith.constant 0 : index
    %c0_4 = arith.constant 0 : index
    %3 = vector.load %arg2[%c0_2, %c0_3, %c0_4] : memref<1x1x8xf32, #tpu.memory_space<vmem>>, vector<1x1x8xf32>
    %4 = vector.shape_cast %3 : vector<1x1x8xf32> to vector<1x8xf32>
    %c0_5 = arith.constant 0 : index
    %c0_6 = arith.constant 0 : index
    %5 = vector.load %arg3[%c0_5, %c0_6] : memref<1x32xf32, #tpu.memory_space<vmem>>, vector<1x32xf32>
    %c0_7 = arith.constant 0 : index
    %c0_8 = arith.constant 0 : index
    %6 = vector.load %arg4[%c0_7, %c0_8] : memref<1x32xf32, #tpu.memory_space<vmem>>, vector<1x32xf32>
    %cst = arith.constant dense<0.000000e+00> : vector<8xf32>
    %7 = vector.multi_reduction <add>, %2, %cst [1] : vector<8x32xf32> to vector<8xf32>
    %8 = vector.shape_cast %7 : vector<8xf32> to vector<8x1xf32>
    %cst_9 = arith.constant 3.200000e+01 : f32
    %9 = vector.broadcast %cst_9 : f32 to vector<8x1xf32>
    %10 = arith.divf %8, %9 : vector<8x1xf32>
    %11 = vector.broadcast %10 : vector<8x1xf32> to vector<8x32xf32>
    %12 = arith.subf %2, %11 : vector<8x32xf32>
    %13 = arith.mulf %12, %12 : vector<8x32xf32>
    %cst_10 = arith.constant dense<0.000000e+00> : vector<8xf32>
    %14 = vector.multi_reduction <add>, %13, %cst_10 [1] : vector<8x32xf32> to vector<8xf32>
    %15 = vector.shape_cast %14 : vector<8xf32> to vector<8x1xf32>
    %cst_11 = arith.constant 3.200000e+01 : f32
    %16 = vector.broadcast %cst_11 : f32 to vector<8x1xf32>
    %17 = arith.divf %15, %16 : vector<8x1xf32>
    %18 = vector.broadcast %10 : vector<8x1xf32> to vector<8x32xf32>
    %19 = arith.subf %2, %18 : vector<8x32xf32>
    %cst_12 = arith.constant 9.99999974E-6 : f32
    %20 = vector.broadcast %cst_12 : f32 to vector<8x1xf32>
    %21 = arith.addf %17, %20 : vector<8x1xf32>
    %22 = math.rsqrt %21 : vector<8x1xf32>
    %23 = vector.broadcast %22 : vector<8x1xf32> to vector<8x32xf32>
    %24 = arith.mulf %19, %23 : vector<8x32xf32>
    %25 = vector.broadcast %5 : vector<1x32xf32> to vector<8x32xf32>
    %26 = arith.mulf %24, %25 : vector<8x32xf32>
    %27 = vector.broadcast %6 : vector<1x32xf32> to vector<8x32xf32>
    %28 = arith.addf %26, %27 : vector<8x32xf32>
    %29 = arith.truncf %28 : vector<8x32xf32> to vector<8x32xbf16>
    %c0_13 = arith.constant 0 : index
    %c0_14 = arith.constant 0 : index
    %30 = vector.load %arg5[%c0_13, %c0_14] : memref<32x96xbf16, #tpu.memory_space<vmem>>, vector<32x96xbf16>
    %cst_15 = arith.constant dense<0.000000e+00> : vector<8x96xf32>
    %31 = tpu.matmul %29, %30, %cst_15 {dimension_numbers = #tpu.dot_dimension_numbers<[1], [0], [0], [1], [0, 0, 1, 1], [], []>} : vector<8x32xbf16>, vector<32x96xbf16>, vector<8x96xf32> -> vector<8x96xf32>
    %c0_16 = arith.constant 0 : index
    %c0_17 = arith.constant 0 : index
    %32 = vector.load %arg6[%c0_16, %c0_17] : memref<1x96xf32, #tpu.memory_space<vmem>>, vector<1x96xf32>
    %33 = vector.broadcast %32 : vector<1x96xf32> to vector<8x96xf32>
    %34 = arith.addf %31, %33 : vector<8x96xf32>
    %35 = arith.truncf %34 : vector<8x96xf32> to vector<8x96xbf16>
    %36 = vector.extract_strided_slice %35 {offsets = [0, 0], sizes = [8, 8], strides = [1, 1]} : vector<8x96xbf16> to vector<8x8xbf16>
    %37 = vector.extract_strided_slice %35 {offsets = [0, 32], sizes = [8, 8], strides = [1, 1]} : vector<8x96xbf16> to vector<8x8xbf16>
    %38 = vector.extract_strided_slice %35 {offsets = [0, 64], sizes = [8, 8], strides = [1, 1]} : vector<8x96xbf16> to vector<8x8xbf16>
    %cst_18 = arith.constant dense<0.000000e+00> : vector<8x8xf32>
    %39 = tpu.matmul %36, %37, %cst_18 {dimension_numbers = #tpu.dot_dimension_numbers<[1], [1], [0], [0], [0, 0, 1, 0], [], []>} : vector<8x8xbf16>, vector<8x8xbf16>, vector<8x8xf32> -> vector<8x8xf32>
    %cst_19 = arith.constant 0.353553385 : f32
    %40 = vector.broadcast %cst_19 : f32 to vector<8x8xf32>
    %41 = arith.mulf %39, %40 : vector<8x8xf32>
    %42 = vector.broadcast %4 : vector<1x8xf32> to vector<8x8xf32>
    %43 = arith.addf %41, %42 : vector<8x8xf32>
    %cst_20 = arith.constant dense<0xFF800000> : vector<8xf32>
    %44 = vector.multi_reduction <maximumf>, %43, %cst_20 [1] : vector<8x8xf32> to vector<8xf32>
    %45 = vector.shape_cast %44 : vector<8xf32> to vector<8x1xf32>
    %46 = vector.broadcast %45 : vector<8x1xf32> to vector<8x8xf32>
    %47 = arith.subf %43, %46 : vector<8x8xf32>
    %48 = math.exp %47 : vector<8x8xf32>
    %cst_21 = arith.constant dense<0.000000e+00> : vector<8xf32>
    %49 = vector.multi_reduction <add>, %48, %cst_21 [1] : vector<8x8xf32> to vector<8xf32>
    %50 = vector.shape_cast %49 : vector<8xf32> to vector<8x1xf32>
    %51 = tpu.reciprocal %50 {approx = true} : vector<8x1xf32> -> vector<8x1xf32>
    %52 = vector.broadcast %51 : vector<8x1xf32> to vector<8x8xf32>
    %53 = arith.mulf %48, %52 : vector<8x8xf32>
    %54 = arith.truncf %53 : vector<8x8xf32> to vector<8x8xbf16>
    %cst_22 = arith.constant dense<0.000000e+00> : vector<8x8xf32>
    %55 = tpu.matmul %54, %38, %cst_22 {dimension_numbers = #tpu.dot_dimension_numbers<[1], [0], [0], [1], [0, 0, 1, 1], [], []>} : vector<8x8xbf16>, vector<8x8xbf16>, vector<8x8xf32> -> vector<8x8xf32>
    %56 = vector.extract_strided_slice %35 {offsets = [0, 8], sizes = [8, 8], strides = [1, 1]} : vector<8x96xbf16> to vector<8x8xbf16>
    %57 = vector.extract_strided_slice %35 {offsets = [0, 40], sizes = [8, 8], strides = [1, 1]} : vector<8x96xbf16> to vector<8x8xbf16>
    %58 = vector.extract_strided_slice %35 {offsets = [0, 72], sizes = [8, 8], strides = [1, 1]} : vector<8x96xbf16> to vector<8x8xbf16>
    %cst_23 = arith.constant dense<0.000000e+00> : vector<8x8xf32>
    %59 = tpu.matmul %56, %57, %cst_23 {dimension_numbers = #tpu.dot_dimension_numbers<[1], [1], [0], [0], [0, 0, 1, 0], [], []>} : vector<8x8xbf16>, vector<8x8xbf16>, vector<8x8xf32> -> vector<8x8xf32>
    %cst_24 = arith.constant 0.353553385 : f32
    %60 = vector.broadcast %cst_24 : f32 to vector<8x8xf32>
    %61 = arith.mulf %59, %60 : vector<8x8xf32>
    %62 = vector.broadcast %4 : vector<1x8xf32> to vector<8x8xf32>
    %63 = arith.addf %61, %62 : vector<8x8xf32>
    %cst_25 = arith.constant dense<0xFF800000> : vector<8xf32>
    %64 = vector.multi_reduction <maximumf>, %63, %cst_25 [1] : vector<8x8xf32> to vector<8xf32>
    %65 = vector.shape_cast %64 : vector<8xf32> to vector<8x1xf32>
    %66 = vector.broadcast %65 : vector<8x1xf32> to vector<8x8xf32>
    %67 = arith.subf %63, %66 : vector<8x8xf32>
    %68 = math.exp %67 : vector<8x8xf32>
    %cst_26 = arith.constant dense<0.000000e+00> : vector<8xf32>
    %69 = vector.multi_reduction <add>, %68, %cst_26 [1] : vector<8x8xf32> to vector<8xf32>
    %70 = vector.shape_cast %69 : vector<8xf32> to vector<8x1xf32>
    %71 = tpu.reciprocal %70 {approx = true} : vector<8x1xf32> -> vector<8x1xf32>
    %72 = vector.broadcast %71 : vector<8x1xf32> to vector<8x8xf32>
    %73 = arith.mulf %68, %72 : vector<8x8xf32>
    %74 = arith.truncf %73 : vector<8x8xf32> to vector<8x8xbf16>
    %cst_27 = arith.constant dense<0.000000e+00> : vector<8x8xf32>
    %75 = tpu.matmul %74, %58, %cst_27 {dimension_numbers = #tpu.dot_dimension_numbers<[1], [0], [0], [1], [0, 0, 1, 1], [], []>} : vector<8x8xbf16>, vector<8x8xbf16>, vector<8x8xf32> -> vector<8x8xf32>
    %76 = vector.extract_strided_slice %35 {offsets = [0, 16], sizes = [8, 8], strides = [1, 1]} : vector<8x96xbf16> to vector<8x8xbf16>
    %77 = vector.extract_strided_slice %35 {offsets = [0, 48], sizes = [8, 8], strides = [1, 1]} : vector<8x96xbf16> to vector<8x8xbf16>
    %78 = vector.extract_strided_slice %35 {offsets = [0, 80], sizes = [8, 8], strides = [1, 1]} : vector<8x96xbf16> to vector<8x8xbf16>
    %cst_28 = arith.constant dense<0.000000e+00> : vector<8x8xf32>
    %79 = tpu.matmul %76, %77, %cst_28 {dimension_numbers = #tpu.dot_dimension_numbers<[1], [1], [0], [0], [0, 0, 1, 0], [], []>} : vector<8x8xbf16>, vector<8x8xbf16>, vector<8x8xf32> -> vector<8x8xf32>
    %cst_29 = arith.constant 0.353553385 : f32
    %80 = vector.broadcast %cst_29 : f32 to vector<8x8xf32>
    %81 = arith.mulf %79, %80 : vector<8x8xf32>
    %82 = vector.broadcast %4 : vector<1x8xf32> to vector<8x8xf32>
    %83 = arith.addf %81, %82 : vector<8x8xf32>
    %cst_30 = arith.constant dense<0xFF800000> : vector<8xf32>
    %84 = vector.multi_reduction <maximumf>, %83, %cst_30 [1] : vector<8x8xf32> to vector<8xf32>
    %85 = vector.shape_cast %84 : vector<8xf32> to vector<8x1xf32>
    %86 = vector.broadcast %85 : vector<8x1xf32> to vector<8x8xf32>
    %87 = arith.subf %83, %86 : vector<8x8xf32>
    %88 = math.exp %87 : vector<8x8xf32>
    %cst_31 = arith.constant dense<0.000000e+00> : vector<8xf32>
    %89 = vector.multi_reduction <add>, %88, %cst_31 [1] : vector<8x8xf32> to vector<8xf32>
    %90 = vector.shape_cast %89 : vector<8xf32> to vector<8x1xf32>
    %91 = tpu.reciprocal %90 {approx = true} : vector<8x1xf32> -> vector<8x1xf32>
    %92 = vector.broadcast %91 : vector<8x1xf32> to vector<8x8xf32>
    %93 = arith.mulf %88, %92 : vector<8x8xf32>
    %94 = arith.truncf %93 : vector<8x8xf32> to vector<8x8xbf16>
    %cst_32 = arith.constant dense<0.000000e+00> : vector<8x8xf32>
    %95 = tpu.matmul %94, %78, %cst_32 {dimension_numbers = #tpu.dot_dimension_numbers<[1], [0], [0], [1], [0, 0, 1, 1], [], []>} : vector<8x8xbf16>, vector<8x8xbf16>, vector<8x8xf32> -> vector<8x8xf32>
    %96 = vector.extract_strided_slice %35 {offsets = [0, 24], sizes = [8, 8], strides = [1, 1]} : vector<8x96xbf16> to vector<8x8xbf16>
    %97 = vector.extract_strided_slice %35 {offsets = [0, 56], sizes = [8, 8], strides = [1, 1]} : vector<8x96xbf16> to vector<8x8xbf16>
    %98 = vector.extract_strided_slice %35 {offsets = [0, 88], sizes = [8, 8], strides = [1, 1]} : vector<8x96xbf16> to vector<8x8xbf16>
    %cst_33 = arith.constant dense<0.000000e+00> : vector<8x8xf32>
    %99 = tpu.matmul %96, %97, %cst_33 {dimension_numbers = #tpu.dot_dimension_numbers<[1], [1], [0], [0], [0, 0, 1, 0], [], []>} : vector<8x8xbf16>, vector<8x8xbf16>, vector<8x8xf32> -> vector<8x8xf32>
    %cst_34 = arith.constant 0.353553385 : f32
    %100 = vector.broadcast %cst_34 : f32 to vector<8x8xf32>
    %101 = arith.mulf %99, %100 : vector<8x8xf32>
    %102 = vector.broadcast %4 : vector<1x8xf32> to vector<8x8xf32>
    %103 = arith.addf %101, %102 : vector<8x8xf32>
    %cst_35 = arith.constant dense<0xFF800000> : vector<8xf32>
    %104 = vector.multi_reduction <maximumf>, %103, %cst_35 [1] : vector<8x8xf32> to vector<8xf32>
    %105 = vector.shape_cast %104 : vector<8xf32> to vector<8x1xf32>
    %106 = vector.broadcast %105 : vector<8x1xf32> to vector<8x8xf32>
    %107 = arith.subf %103, %106 : vector<8x8xf32>
    %108 = math.exp %107 : vector<8x8xf32>
    %cst_36 = arith.constant dense<0.000000e+00> : vector<8xf32>
    %109 = vector.multi_reduction <add>, %108, %cst_36 [1] : vector<8x8xf32> to vector<8xf32>
    %110 = vector.shape_cast %109 : vector<8xf32> to vector<8x1xf32>
    %111 = tpu.reciprocal %110 {approx = true} : vector<8x1xf32> -> vector<8x1xf32>
    %112 = vector.broadcast %111 : vector<8x1xf32> to vector<8x8xf32>
    %113 = arith.mulf %108, %112 : vector<8x8xf32>
    %114 = arith.truncf %113 : vector<8x8xf32> to vector<8x8xbf16>
    %cst_37 = arith.constant dense<0.000000e+00> : vector<8x8xf32>
    %115 = tpu.matmul %114, %98, %cst_37 {dimension_numbers = #tpu.dot_dimension_numbers<[1], [0], [0], [1], [0, 0, 1, 1], [], []>} : vector<8x8xbf16>, vector<8x8xbf16>, vector<8x8xf32> -> vector<8x8xf32>
    %116 = tpu.concatenate %55, %75, %95, %115 in 1 : vector<8x8xf32>, vector<8x8xf32>, vector<8x8xf32>, vector<8x8xf32> -> vector<8x32xf32>
    %117 = arith.truncf %116 : vector<8x32xf32> to vector<8x32xbf16>
    %c0_38 = arith.constant 0 : index
    %c0_39 = arith.constant 0 : index
    %118 = vector.load %arg7[%c0_38, %c0_39] : memref<32x32xbf16, #tpu.memory_space<vmem>>, vector<32x32xbf16>
    %cst_40 = arith.constant dense<0.000000e+00> : vector<8x32xf32>
    %119 = tpu.matmul %117, %118, %cst_40 {dimension_numbers = #tpu.dot_dimension_numbers<[1], [0], [0], [1], [0, 0, 1, 1], [], []>} : vector<8x32xbf16>, vector<32x32xbf16>, vector<8x32xf32> -> vector<8x32xf32>
    %c0_41 = arith.constant 0 : index
    %c0_42 = arith.constant 0 : index
    %120 = vector.load %arg8[%c0_41, %c0_42] : memref<1x32xf32, #tpu.memory_space<vmem>>, vector<1x32xf32>
    %121 = vector.broadcast %120 : vector<1x32xf32> to vector<8x32xf32>
    %122 = arith.addf %119, %121 : vector<8x32xf32>
    %123 = arith.addf %2, %122 : vector<8x32xf32>
    %c0_43 = arith.constant 0 : index
    %c0_44 = arith.constant 0 : index
    %124 = vector.load %arg9[%c0_43, %c0_44] : memref<1x32xf32, #tpu.memory_space<vmem>>, vector<1x32xf32>
    %c0_45 = arith.constant 0 : index
    %c0_46 = arith.constant 0 : index
    %125 = vector.load %arg10[%c0_45, %c0_46] : memref<1x32xf32, #tpu.memory_space<vmem>>, vector<1x32xf32>
    %cst_47 = arith.constant dense<0.000000e+00> : vector<8xf32>
    %126 = vector.multi_reduction <add>, %123, %cst_47 [1] : vector<8x32xf32> to vector<8xf32>
    %127 = vector.shape_cast %126 : vector<8xf32> to vector<8x1xf32>
    %cst_48 = arith.constant 3.200000e+01 : f32
    %128 = vector.broadcast %cst_48 : f32 to vector<8x1xf32>
    %129 = arith.divf %127, %128 : vector<8x1xf32>
    %130 = vector.broadcast %129 : vector<8x1xf32> to vector<8x32xf32>
    %131 = arith.subf %123, %130 : vector<8x32xf32>
    %132 = arith.mulf %131, %131 : vector<8x32xf32>
    %cst_49 = arith.constant dense<0.000000e+00> : vector<8xf32>
    %133 = vector.multi_reduction <add>, %132, %cst_49 [1] : vector<8x32xf32> to vector<8xf32>
    %134 = vector.shape_cast %133 : vector<8xf32> to vector<8x1xf32>
    %cst_50 = arith.constant 3.200000e+01 : f32
    %135 = vector.broadcast %cst_50 : f32 to vector<8x1xf32>
    %136 = arith.divf %134, %135 : vector<8x1xf32>
    %137 = vector.broadcast %129 : vector<8x1xf32> to vector<8x32xf32>
    %138 = arith.subf %123, %137 : vector<8x32xf32>
    %cst_51 = arith.constant 9.99999974E-6 : f32
    %139 = vector.broadcast %cst_51 : f32 to vector<8x1xf32>
    %140 = arith.addf %136, %139 : vector<8x1xf32>
    %141 = math.rsqrt %140 : vector<8x1xf32>
    %142 = vector.broadcast %141 : vector<8x1xf32> to vector<8x32xf32>
    %143 = arith.mulf %138, %142 : vector<8x32xf32>
    %144 = vector.broadcast %124 : vector<1x32xf32> to vector<8x32xf32>
    %145 = arith.mulf %143, %144 : vector<8x32xf32>
    %146 = vector.broadcast %125 : vector<1x32xf32> to vector<8x32xf32>
    %147 = arith.addf %145, %146 : vector<8x32xf32>
    %148 = arith.truncf %147 : vector<8x32xf32> to vector<8x32xbf16>
    %c0_52 = arith.constant 0 : index
    %c0_53 = arith.constant 0 : index
    %149 = vector.load %arg11[%c0_52, %c0_53] : memref<32x128xbf16, #tpu.memory_space<vmem>>, vector<32x128xbf16>
    %cst_54 = arith.constant dense<0.000000e+00> : vector<8x128xf32>
    %150 = tpu.matmul %148, %149, %cst_54 {dimension_numbers = #tpu.dot_dimension_numbers<[1], [0], [0], [1], [0, 0, 1, 1], [], []>} : vector<8x32xbf16>, vector<32x128xbf16>, vector<8x128xf32> -> vector<8x128xf32>
    %c0_55 = arith.constant 0 : index
    %c0_56 = arith.constant 0 : index
    %151 = vector.load %arg12[%c0_55, %c0_56] : memref<1x128xf32, #tpu.memory_space<vmem>>, vector<1x128xf32>
    %152 = vector.broadcast %151 : vector<1x128xf32> to vector<8x128xf32>
    %153 = arith.addf %150, %152 : vector<8x128xf32>
    %cst_57 = arith.constant 0.000000e+00 : f32
    %154 = vector.broadcast %cst_57 : f32 to vector<8x128xf32>
    %155 = arith.maximumf %153, %154 : vector<8x128xf32>
    %156 = arith.truncf %155 : vector<8x128xf32> to vector<8x128xbf16>
    %c0_58 = arith.constant 0 : index
    %c0_59 = arith.constant 0 : index
    %157 = vector.load %arg13[%c0_58, %c0_59] : memref<128x32xbf16, #tpu.memory_space<vmem>>, vector<128x32xbf16>
    %cst_60 = arith.constant dense<0.000000e+00> : vector<8x32xf32>
    %158 = tpu.matmul %156, %157, %cst_60 {dimension_numbers = #tpu.dot_dimension_numbers<[1], [0], [0], [1], [0, 0, 1, 1], [], []>} : vector<8x128xbf16>, vector<128x32xbf16>, vector<8x32xf32> -> vector<8x32xf32>
    %c0_61 = arith.constant 0 : index
    %c0_62 = arith.constant 0 : index
    %159 = vector.load %arg14[%c0_61, %c0_62] : memref<1x32xf32, #tpu.memory_space<vmem>>, vector<1x32xf32>
    %160 = vector.broadcast %159 : vector<1x32xf32> to vector<8x32xf32>
    %161 = arith.addf %158, %160 : vector<8x32xf32>
    %162 = arith.addf %123, %161 : vector<8x32xf32>
    %163 = arith.truncf %162 : vector<8x32xf32> to vector<8x32xbf16>
    %c0_63 = arith.constant 0 : index
    %c0_64 = arith.constant 0 : index
    %c0_65 = arith.constant 0 : index
    %164 = vector.load %arg15[%c0_63, %c0_64, %c0_65] : memref<1x8x32xbf16, #tpu.memory_space<vmem>>, vector<1x8x32xbf16>
    %165 = vector.shape_cast %164 : vector<1x8x32xbf16> to vector<8x32xbf16>
    %166 = vector.shape_cast %163 : vector<8x32xbf16> to vector<1x8x32xbf16>
    tpu.vector_store %arg15[%c0_63, %c0_64, %c0_65], %166 {strides = array<i32>} : memref<1x8x32xbf16, #tpu.memory_space<vmem>>, vector<1x8x32xbf16>,
    return
  }
  func.func @transform_0(%arg0: i32) -> (i32, i32, i32) {
    %c0_i32 = arith.constant 0 : i32
    %c0_i32_0 = arith.constant 0 : i32
    %c0_i32_1 = arith.constant 0 : i32
    return %arg0, %c0_i32, %c0_i32_0 : i32, i32, i32
  }
  func.func @transform_1(%arg0: i32) -> (i32, i32, i32) {
    %c0_i32 = arith.constant 0 : i32
    %c0_i32_0 = arith.constant 0 : i32
    %c0_i32_1 = arith.constant 0 : i32
    return %arg0, %c0_i32, %c0_i32_0 : i32, i32, i32
  }
  func.func @transform_2(%arg0: i32) -> (i32, i32) {
    %c0_i32 = arith.constant 0 : i32
    %c0_i32_0 = arith.constant 0 : i32
    %c0_i32_1 = arith.constant 0 : i32
    return %c0_i32, %c0_i32_0 : i32, i32
  }
  func.func @transform_3(%arg0: i32) -> (i32, i32) {
    %c0_i32 = arith.constant 0 : i32
    %c0_i32_0 = arith.constant 0 : i32
    %c0_i32_1 = arith.constant 0 : i32
    return %c0_i32, %c0_i32_0 : i32, i32
  }
  func.func @transform_4(%arg0: i32) -> (i32, i32) {
    %c0_i32 = arith.constant 0 : i32
    %c0_i32_0 = arith.constant 0 : i32
    %c0_i32_1 = arith.constant 0 : i32
    return %c0_i32, %c0_i32_0 : i32, i32
  }
  func.func @transform_5(%arg0: i32) -> (i32, i32) {
    %c0_i32 = arith.constant 0 : i32
    %c0_i32_0 = arith.constant 0 : i32
    %c0_i32_1 = arith.constant 0 : i32
    return %c0_i32, %c0_i32_0 : i32, i32
  }
  func.func @transform_6(%arg0: i32) -> (i32, i32) {
    %c0_i32 = arith.constant 0 : i32
    %c0_i32_0 = arith.constant 0 : i32
    %c0_i32_1 = arith.constant 0 : i32
    return %c0_i32, %c0_i32_0 : i32, i32
  }
  func.func @transform_7(%arg0: i32) -> (i32, i32) {
    %c0_i32 = arith.constant 0 : i32
    %c0_i32_0 = arith.constant 0 : i32
    %c0_i32_1 = arith.constant 0 : i32
    return %c0_i32, %c0_i32_0 : i32, i32
  }
  func.func @transform_8(%arg0: i32) -> (i32, i32) {
    %c0_i32 = arith.constant 0 : i32
    %c0_i32_0 = arith.constant 0 : i32
    %c0_i32_1 = arith.constant 0 : i32
    return %c0_i32, %c0_i32_0 : i32, i32
  }
  func.func @transform_9(%arg0: i32) -> (i32, i32) {
    %c0_i32 = arith.constant 0 : i32
    %c0_i32_0 = arith.constant 0 : i32
    %c0_i32_1 = arith.constant 0 : i32
    return %c0_i32, %c0_i32_0 : i32, i32
  }
  func.func @transform_10(%arg0: i32) -> (i32, i32) {
    %c0_i32 = arith.constant 0 : i32
    %c0_i32_0 = arith.constant 0 : i32
    %c0_i32_1 = arith.constant 0 : i32
    return %c0_i32, %c0_i32_0 : i32, i32
  }
  func.func @transform_11(%arg0: i32) -> (i32, i32) {
    %c0_i32 = arith.constant 0 : i32
    %c0_i32_0 = arith.constant 0 : i32
    %c0_i32_1 = arith.constant 0 : i32
    return %c0_i32, %c0_i32_0 : i32, i32
  }
  func.func @transform_12(%arg0: i32) -> (i32, i32) {
    %c0_i32 = arith.constant 0 : i32
    %c0_i32_0 = arith.constant 0 : i32
    %c0_i32_1 = arith.constant 0 : i32
    return %c0_i32, %c0_i32_0 : i32, i32
  }
  func.func @transform_13(%arg0: i32) -> (i32, i32) {
    %c0_i32 = arith.constant 0 : i32
    %c0_i32_0 = arith.constant 0 : i32
    %c0_i32_1 = arith.constant 0 : i32
    return %c0_i32, %c0_i32_0 : i32, i32
  }
  func.func @transform_14(%arg0: i32) -> (i32, i32, i32) {
    %c0_i32 = arith.constant 0 : i32
    %c0_i32_0 = arith.constant 0 : i32
    %c0_i32_1 = arith.constant 0 : i32
    return %arg0, %c0_i32, %c0_i32_0 : i32, i32, i32
  }
}

</mosaic_0001>

<bundles_post_ra>
// kernel: encoder_forward.5
= control target key start
LH: loop header
LB: loop body
LE: loop exit
PB: predicated region body
PF: predicated region fallthrough
CT: control target
= control target key end

     0   :  { %vm20_vm0 = vcmask 261120   ;;  %v101_v5 = vmov 32.0   ;;  %s143_s0 = inlined_call_operand.vmem [shape: bf16[16,32], index: 0, kind: input, shape index: {}]   ;;  %s144_s1 = inlined_call_operand.vmem [shape: f32[1,32], index: 1, kind: input, shape index: {}]   ;;  %s145_s2 = inlined_call_operand.vmem [shape: f32[1,32], index: 2, kind: input, shape index: {}]   ;;  %s146_s3 = inlined_call_operand.vmem [shape: f32[16,32], index: 3, kind: output, shape index: {}]  }
   0x1   :  { %v89_v0 = vld [vmem:[%s143_s0] sm:$0xff]   ;;  %95 = vrcp.f32 %v101_v5 }
   0x2   :  { %v90_v1 = vunpack.c.l.bf16 %v89_v0  ;;  %v91_v3 = vunpack.c.h.bf16 %v89_v0  ;;  %v93_v36 = vld [vmem:[%s144_s1] ss:$0 sm:$0xff] }
   0x3   :  { %v94_v39 = vld [vmem:[%s145_s2] ss:$0 sm:$0xff] }
   0x4   :  { %v21_v2 = vsel %vm20_vm0, %v90_v1, 0.0  ;;  %v24_v4 = vsel %vm20_vm0, %v91_v3, 0.0 }
   0x5   :  { %22 = vadd.xlane.f32.xlu0 %v21_v2 }
   0x7   :  { %v96_v6 = vpop.eup %95 }
   0x8   :  { %v28_v7 = vmul.f32 32.0, %v96_v6  ;;  %vm32_vm1 = vweird.f32 %v96_v6 }
   0xa   :  { %v29_v8 = vsub.f32 1.0, %v28_v7 }
   0xc   :  { %v30_v9 = vmul.f32 %v96_v6, %v29_v8 }
   0xd   :  { %25 = vadd.xlane.f32.xlu0 %v24_v4 }
   0xe   :  { %v31_v10 = vadd.f32 %v96_v6, %v30_v9 }
  0x10   :  { %v33_v11 = vsel %vm32_vm1, %v96_v6, %v31_v10 }
  0x78   :  { %v23_v12 = vpop.xlane.xlu0 %22 }
  0x79   :  { %v34_v13 = vmul.f32 %v33_v11, %v23_v12 }
  0x7b   :  { %v36_v14 = vsub.f32 %v90_v1, %v34_v13 }
  0x7d   :  { %v38_v15 = vmul.f32 %v36_v14, %v36_v14 }
  0x7f   :  { %v40_v16 = vsel %vm20_vm0, %v38_v15, 0.0 }
  0x80   :  { %41 = vadd.xlane.f32.xlu1 %v40_v16  ;;  %v26_v17 = vpop.xlane.xlu0 %25 }
  0x81   :  { %v35_v18 = vmul.f32 %v33_v11, %v26_v17 }
  0x83   :  { %v37_v19 = vsub.f32 %v91_v3, %v35_v18 }
  0x85   :  { %v39_v20 = vmul.f32 %v37_v19, %v37_v19 }
  0x87   :  { %v43_v21 = vsel %vm20_vm0, %v39_v20, 0.0 }
  0x88   :  { %44 = vadd.xlane.f32.xlu1 %v43_v21 }
  0xf3   :  { %v42_v22 = vpop.xlane.xlu1 %41 }
  0xf4   :  { %v46_v23 = vmul.f32 %v42_v22, %v33_v11 }
  0xf6   :  { %v48_v24 = vadd.f32 1e-05, %v46_v23 }
  0xf8   :  { %97 = vrsqrt.f32 %v48_v24  ;;  %vm56_vm3 = vweird.f32 %v48_v24 }
  0xfb   :  { %v45_v25 = vpop.xlane.xlu1 %44 }
  0xfc   :  { %v47_v26 = vmul.f32 %v45_v25, %v33_v11 }
  0xfe   :  { %v98_v27 = vpop.eup %97  ;;  %v49_v28 = vadd.f32 1e-05, %v47_v26 }
  0xff   :  { %v51_v29 = vmul.f32 %v98_v27, %v48_v24  ;;  %vm57_vm2 = vweird.f32 %v98_v27 }
 0x100   :  { %99 = vrsqrt.f32 %v49_v28  ;;  %vm58_vm4 = vmor %vm56_vm3, %vm57_vm2  ;;  %vm66_vm6 = vweird.f32 %v49_v28 }
 0x101   :  { %v52_v30 = vmul.f32 %v98_v27, %v51_v29 }
 0x103   :  { %v53_v31 = vmul.f32 0.5, %v52_v30 }
 0x105   :  { %v54_v32 = vsub.f32 1.5, %v53_v31 }
 0x106   :  { %v100_v33 = vpop.eup %99 }
 0x107   :  { %v55_v34 = vmul.f32 %v98_v27, %v54_v32  ;;  %v61_v35 = vmul.f32 %v100_v33, %v49_v28  ;;  %vm67_vm5 = vweird.f32 %v100_v33 }
 0x108   :  { %vm68_vm7 = vmor %vm66_vm6, %vm67_vm5 }
 0x109   :  { %v59_v37 = vsel %vm58_vm4, %v98_v27, %v55_v34  ;;  %v62_v38 = vmul.f32 %v100_v33, %v61_v35 }
 0x10a   :  { %v70_v40 = vmul.f32 %v59_v37, %v36_v14 }
 0x10b   :  { %v63_v41 = vmul.f32 0.5, %v62_v38 }
 0x10c   :  { %v75_v42 = vmul.f32 %v93_v36, %v70_v40 }
 0x10d   :  { %v64_v43 = vsub.f32 1.5, %v63_v41 }
 0x10e   :  { %v80_v44 = vadd.f32 %v94_v39, %v75_v42 }
 0x10f   :  { %v65_v45 = vmul.f32 %v100_v33, %v64_v43 }
 0x110   :  { %82 = vst.msk [vmem:[%s146_s3] sm:$0xff] %vm20_vm0, %v80_v44 }
 0x111   :  { %v69_v46 = vsel %vm68_vm7, %v100_v33, %v65_v45 }
 0x112   :  { %v71_v47 = vmul.f32 %v69_v46, %v37_v19 }
 0x114   :  { %v76_v48 = vmul.f32 %v93_v36, %v71_v47 }
 0x116   :  { %v81_v49 = vadd.f32 %v94_v39, %v76_v48 }
 0x118   :  { %83 = vst.msk [vmem:[%s146_s3 + $0x8] sm:$0xff] %vm20_vm0, %v81_v49 }

// kernel: encoder_forward.3
= control target key start
LH: loop header
LB: loop body
LE: loop exit
PB: predicated region body
PF: predicated region fallthrough
CT: control target
= control target key end

     0   :  { %s1312_s29 = smov 0   ;;  %s1470_s0 = inlined_call_operand.vmem [shape: bf16[2,8,32], index: 0, kind: input, shape index: {}]   ;;  %s1471_s1 = inlined_call_operand.vmem [shape: f32[2,1,8], index: 1, kind: input, shape index: {}]   ;;  %s1472_s2 = inlined_call_operand.vmem [shape: f32[1,32], index: 2, kind: input, shape index: {}]   ;;  %s1473_s3 = inlined_call_operand.vmem [shape: f32[1,32], index: 3, kind: input, shape index: {}]   ;;  %s1474_s4 = inlined_call_operand.vmem [shape: bf16[32,96], index: 4, kind: input, shape index: {}]   ;;  %s1475_s5 = inlined_call_operand.vmem [shape: f32[1,96], index: 5, kind: input, shape index: {}]   ;;  %s1476_s6 = inlined_call_operand.vmem [shape: bf16[32,32], index: 6, kind: input, shape index: {}]   ;;  %s1477_s7 = inlined_call_operand.vmem [shape: f32[1,32], index: 7, kind: input, shape index: {}]   ;;  %s1478_s8 = inlined_call_operand.vmem [shape: f32[1,32], index: 8, kind: input, shape index: {}]   ;;  %s1479_s9 = inlined_call_operand.vmem [shape: f32[1,32], index: 9, kind: input, shape index: {}]   ;;  %s1480_s10 = inlined_call_operand.vmem [shape: bf16[32,128], index: 10, kind: input, shape index: {}]   ;;  %s1481_s11 = inlined_call_operand.vmem [shape: f32[1,128], index: 11, kind: input, shape index: {}]   ;;  %s1482_s12 = inlined_call_operand.vmem [shape: bf16[128,32], index: 12, kind: input, shape index: {}]   ;;  %s1483_s13 = inlined_call_operand.vmem [shape: f32[1,32], index: 13, kind: input, shape index: {}]   ;;  %s1484_s14 = inlined_call_operand.vmem [shape: bf16[2,8,32], index: 14, kind: output, shape index: {}]  }
   0x1 LB: > { %s1070_s30 = sadd.s32 4294967295, %s1220_s29   ;;  %p1074_p0 = scmp.ge.s32.totalorder %s1220_s29, 1  ;;  %s1220_s29 = sphi %s1312_s29, %s24_s29  }
   0x2   : > { %p419_p1 = scmp.lt.s32.totalorder %s1220_s29, 3 }
   0x4   : > { %p420_p2 = pnand %p1074_p0, %p419_p1 }
   0x5   : > { %p466_p3 = scmp.lt.s32.totalorder (!%p420_p2), %s1070_s30, 1  ;;  %s1223_s20 = smov (!%p420_p2), 88  }
   0x6   : > { %423 = sbr.rel (%p420_p2) target bundleno = 2304 (0x900), region = 76  ;;  %s1225_s22 = smov (!%p420_p2), 96  }
   0x7   : > { %s1226_s23 = smov (!%p420_p2), 72   ;;  %s1227_s24 = smov (!%p420_p2), 80  }
   0x8   : > { %s1228_s27 = smov (!%p420_p2), 120   ;;  %s1229_s28 = smov (!%p420_p2), 104  }
   0x9   : > { %s1231_s16 = smov (!%p420_p2), 40   ;;  %s1232_s17 = smov (!%p420_p2), 48  }
   0xa   : > { %s1233_s19 = smov (!%p420_p2), 56  }
   0xb   : > { %s1486_s30 = smov (!%p466_p3, %s1070_s30), 1  ;;  %vm483_vm0 = vcmask 261120   ;;  %v1222_v3 = vmov 32.0   ;;  %v1147_v15 = vld [vmem:[%s1474_s4 + $0x8] sm:$0xff]  ;;  %v1146_v16 = vld [vmem:[%s1474_s4] sm:$0xff]  ;;  %vm606_vm5 = vcmask 1043456  }
   0xc   : > { %s1075_s15 = sshll.u32 %s1486_s30, 2  ;;  %s472_s18 = scalar_lea.vmem %s1471_s1, %s1486_s30  ;;  %1192 = vrcp.f32 %v1222_v3  ;;  %551 = vmatpush.bf16.msra.mxu0 %v1147_v15  ;;  %v1184_v26 = vld [vmem:[%s1472_s2] ss:$0 sm:$0xff]  ;;  %vm564_vm6 = vcmask 64512   ;;  %vm810_vm7 = vcmask 130048   ;;  %vm812_vm8 = vcmask 195584  }
   0xd   : > { %s469_s21 = scalar_lea.vmem %s1470_s0, %s1075_s15  ;;  %v1185_v29 = vld [vmem:[%s1473_s3] ss:$0 sm:$0xff]  ;;  %vm1006_vm12 = vcmask 257024  }
   0xe   : > { %v478_v0 = vld [vmem:[%s469_s21] sm:$0xf]  ;;  %s1224_s21 = smov 64  }
   0xf   : > { %v1332_v1 = vunpack.c.l.bf16 %v478_v0  ;;  %v1186_v33 = vld [vmem:[%s1475_s5] ss:$0 sm:$0xff] }
  0x10   : > { %552 = vmatpush.bf16.msra.mxu0 %v1146_v16  ;;  %v1183_v50 = vld [vmem:[%s472_s18] ss:$0 sm:$0xff]  ;;  %s1230_s18 = smov 112  }
  0x11   : > { %v484_v2 = vsel %vm483_vm0, %v1332_v1, 0.0 }
  0x12   : > { %485 = vadd.xlane.f32.xlu0 %v484_v2  ;;  %v1193_v4 = vpop.eup %1192 }
  0x13   : > { %v488_v5 = vmul.f32 32.0, %v1193_v4  ;;  %vm492_vm1 = vweird.f32 %v1193_v4 }
  0x15   : > { %v489_v6 = vsub.f32 1.0, %v488_v5 }
  0x17   : > { %v490_v7 = vmul.f32 %v1193_v4, %v489_v6 }
  0x19   : > { %v491_v8 = vadd.f32 %v1193_v4, %v490_v7 }
  0x1b   : > { %v1336_v9 = vsel %vm492_vm1, %v1193_v4, %v491_v8 }
  0x85   : > { %v486_v10 = vpop.xlane.xlu0 %485 }
  0x86   : > { %v494_v11 = vmul.f32 %v1336_v9, %v486_v10 }
  0x88   : > { %v495_v12 = vsub.f32 %v1332_v1, %v494_v11 }
  0x8a   : > { %v496_v13 = vmul.f32 %v495_v12, %v495_v12 }
  0x8c   : > { %v497_v14 = vsel %vm483_vm0, %v496_v13, 0.0 }
  0x8d   : > { %498 = vadd.xlane.f32.xlu0 %v497_v14 }
 0x100   : > { %v499_v17 = vpop.xlane.xlu0 %498 }
 0x101   : > { %v500_v18 = vmul.f32 %v499_v17, %v1336_v9 }
 0x103   : > { %v501_v19 = vadd.f32 1e-05, %v500_v18 }
 0x105   : > { %1194 = vrsqrt.f32 %v501_v19  ;;  %vm508_vm3 = vweird.f32 %v501_v19 }
 0x10b   : > { %v1195_v20 = vpop.eup %1194 }
 0x10c   : > { %v503_v21 = vmul.f32 %v1195_v20, %v501_v19  ;;  %vm509_vm2 = vweird.f32 %v1195_v20 }
 0x10d   : > { %vm510_vm4 = vmor %vm508_vm3, %vm509_vm2 }
 0x10e   : > { %v504_v22 = vmul.f32 %v1195_v20, %v503_v21 }
 0x110   : > { %v505_v23 = vmul.f32 0.5, %v504_v22 }
 0x112   : > { %v506_v24 = vsub.f32 1.5, %v505_v23 }
 0x114   : > { %v507_v25 = vmul.f32 %v1195_v20, %v506_v24 }
 0x116   : > { %v511_v27 = vsel %vm510_vm4, %v1195_v20, %v507_v25 }
 0x117   : > { %v512_v28 = vmul.f32 %v511_v27, %v495_v12 }
 0x119   : > { %v516_v30 = vmul.f32 %v1184_v26, %v512_v28 }
 0x11b   : > { %v520_v31 = vadd.f32 %v1185_v29, %v516_v30 }
 0x11d   : > { %v521_v32 = vpack.c.bf16 %v520_v31, %v520_v31 }
 0x11f   : > { %1085 = vmatmul.msk.bf16.vlgmr.msra.gmra.mxu0 %vm483_vm0, %v521_v32 }
 0x19c   : > { %v554_v34 = vpop.f32.mrf.mxu0 }
 0x19d   : > { %v555_v35 = vadd.f32 %v1186_v33, %v554_v34 }
 0x19f   : > { %v558_v36 = vpack.c.bf16 %v555_v35, %v555_v35 }
 0x1a1   : > { %v560_v37 = vunpack.c.l.b16 %v558_v36 }
 0x1a3   : > { %v1358_v38 = vpack.c.b16 %v560_v37, %v560_v37 }
 0x1a4   : > { %v556_v39 = vpop.f32.mrf.mxu0 }
 0x1a5   : > { %625 = vrot.lane.b32.xlu0 %v1358_v38, %s1223_s20  ;;  %601 = vrot.lane.b32.xlu2 %v1358_v38, %s1224_s21  ;;  %s1234_s20 = smov 16   ;;  %s1235_s21 = smov 8  }
 0x1a6   : > { %562 = vrot.lane.b32.xlu1 %v1358_v38, %s1225_s22  ;;  %s1236_s22 = smov 24  }
 0x1ad   : > { %741 = vrot.lane.b32.xlu0 %v1358_v38, %s1226_s23 }
 0x1b5   : > { %683 = vrot.lane.b32.xlu0 %v1358_v38, %s1227_s24 }
 0x1ff   : > { %v602_v40 = vpop.permute.xlu2 %601 }
 0x200   : > { %v608_v41 = vsel %vm606_vm5, %v602_v40, 0 }
 0x201   : > { %617 = vmatpush.bf16.msra.mxu2 %v608_v41 }
 0x217   : > { %v626_v42 = vpop.permute.xlu0 %625 }
 0x218   : > { %v563_v43 = vpop.permute.xlu1 %562  ;;  %v631_v44 = vsel %vm564_vm6, %v626_v42, 0 }
 0x219   : > { %v569_v45 = vsel %vm564_vm6, %v563_v43, 0  ;;  %640 = vmatpush.bf16.xpose.msrb.mxu2 %v631_v44 }
 0x21a   : > { %578 = vmatpush.bf16.xpose.msra.mxu1 %v569_v45 }
 0x21f   : > { %v742_v46 = vpop.permute.xlu0 %741 }
 0x220   : > { %v747_v47 = vsel %vm564_vm6, %v742_v46, 0 }
 0x221   : > { %1086 = vmatmul.msk.bf16.vlgmr.msra.gmra.mxu1 %vm564_vm6, %v558_v36  ;;  %756 = vmatpush.bf16.xpose.msra.mxu3 %v747_v47 }
 0x227   : > { %v684_v48 = vpop.permute.xlu0 %683 }
 0x228   : > { %v689_v49 = vsel %vm564_vm6, %v684_v48, 0 }
 0x229   : > { %698 = vmatpush.bf16.xpose.msrb.mxu0 %v689_v49 }
 0x29e   : > { %v580_v51 = vpop.f32.mrf.mxu1 }
 0x29f   : > { %v584_v52 = vmul.f32 0.35355338, %v580_v51 }
 0x2a1   : > { %v588_v53 = vadd.f32 %v1183_v50, %v584_v52 }
 0x2a3   : > { %v589_v54 = vsel %vm564_vm6, %v588_v53, -inf }
 0x2a4   : > { %590 = vmax.xlane.f32.xlu1 %v589_v54 }
 0x2a6   : > { %v582_v55 = vpop.f32.mrf.mxu1 }
 0x317   : > { %v591_v56 = vpop.xlane.xlu1 %590 }
 0x318   : > { %v592_v57 = vsub.f32 %v588_v53, %v591_v56 }
 0x31a   : > { %v593_v58 = vmul.f32 1.442695, %v592_v57 }
 0x31c   : > { %1196 = vpow2.f32 %v593_v58 }
 0x322   : > { %v1197_v59 = vpop.eup %1196 }
 0x323   : > { %v595_v60 = vsel %vm564_vm6, %v1197_v59, 0.0 }
 0x324   : > { %596 = vadd.xlane.f32.xlu2 %v595_v60 }
 0x33c   : > { %623 = vrot.lane.b32.xlu2 %v1358_v38, %s1228_s27 }
 0x344   : > { %739 = vrot.lane.b32.xlu2 %v1358_v38, %s1229_s28 }
 0x34c   : > { %681 = vrot.lane.b32.xlu2 %v1358_v38, %s1230_s18 }
 0x397   : > { %v597_v61 = vpop.xlane.xlu2 %596 }
 0x398   : > { %1198 = vrcp.f32 %v597_v61 }
 0x39e   : > { %v1199_v62 = vpop.eup %1198 }
 0x39f   : > { %v624_v63 = vpop.permute.xlu2 %623  ;;  %v599_v0 = vmul.f32 %v1199_v62, %v1197_v59  ;;  %v1149_v62 = vld [vmem:[%s1476_s6 + $0x8] sm:$0xff] }
 0x3a0   : > { %844 = vmatpush.bf16.msra.mxu0 %v1149_v62 }
 0x3a1   : > { %v600_v2 = vpack.c.bf16 %v599_v0, %v599_v0 }
 0x3a3   : > { %1087 = vmatmul.msk.bf16.vlgmr.msra.gmra.mxu2 %vm564_vm6, %v600_v2 }
 0x3a7   : > { %v740_v3 = vpop.permute.xlu2 %739 }
 0x3a8   : > { %1092 = vmatmul.msk.bf16.vlgmr.msra.gmra.mxu3 %vm564_vm6, %v740_v3 }
 0x3af   : > { %v682_v4 = vpop.permute.xlu2 %681 }
 0x3b0   : > { %1090 = vmatmul.msk.bf16.vlgmr.msrb.gmra.mxu0 %vm564_vm6, %v682_v4 }
 0x3b3   : > { %1088 = vmatmul.msk.bf16.vlgmr.msrb.gmra.mxu2 %vm564_vm6, %v624_v63  ;;  %v1148_v63 = vld [vmem:[%s1476_s6] sm:$0xff] }
 0x3b4   : > { %845 = vmatpush.bf16.msra.mxu0 %v1148_v63 }
 0x426   : > { %v1385_v5 = vpop.f32.mrf.mxu2 }
 0x42b   : > { %v758_v6 = vpop.f32.mrf.mxu3 }
 0x42c   : > { %v762_v7 = vmul.f32 0.35355338, %v758_v6 }
 0x42d   : > { %v700_v8 = vpop.f32.mrf.mxu0 }
 0x42e   : > { %v704_v10 = vmul.f32 0.35355338, %v700_v8  ;;  %v621_v11 = vpop.f32.mrf.mxu2  ;;  %v763_v12 = vadd.f32 %v1183_v50, %v762_v7 }
 0x430   : > { %v764_v13 = vsel %vm564_vm6, %v763_v12, -inf  ;;  %v705_v14 = vadd.f32 %v1183_v50, %v704_v10  ;;  %v1187_v10 = vld [vmem:[%s1477_s7] ss:$0 sm:$0xff] }
 0x431   : > { %765 = vmax.xlane.f32.xlu0 %v764_v13 }
 0x432   : > { %v706_v15 = vsel %vm564_vm6, %v705_v14, -inf }
 0x433   : > { %v760_v16 = vpop.f32.mrf.mxu3  ;;  %707 = vmax.xlane.f32.xlu2 %v706_v15 }
 0x435   : > { %v702_v17 = vpop.f32.mrf.mxu0 }
 0x436   : > { %v642_v18 = vpop.f32.mrf.mxu2 }
 0x437   : > { %v646_v19 = vmul.f32 0.35355338, %v642_v18 }
 0x439   : > { %v647_v20 = vadd.f32 %v1183_v50, %v646_v19 }
 0x43b   : > { %v648_v21 = vsel %vm564_vm6, %v647_v20, -inf }
 0x43c   : > { %649 = vmax.xlane.f32.xlu1 %v648_v21  ;;  %v1159_v21 = vld [vmem:[%s1482_s12 + $0x38] sm:$0xff] }
 0x43d   : > { %991 = vmatpush.bf16.msrb.mxu3 %v1159_v21 }
 0x43e   : > { %v644_v22 = vpop.f32.mrf.mxu2 }
 0x44b   : > { %776 = vrot.lane.b32.xlu2 %v1358_v38, %s1231_s16 }
 0x4a4   : > { %v766_v33 = vpop.xlane.xlu0 %765 }
 0x4a5   : > { %v767_v34 = vsub.f32 %v763_v12, %v766_v33 }
 0x4a6   : > { %v708_v23 = vpop.xlane.xlu2 %707 }
 0x4a7   : > { %v709_v24 = vsub.f32 %v705_v14, %v708_v23  ;;  %v768_v35 = vmul.f32 1.442695, %v767_v34 }
 0x4a9   : > { %v710_v25 = vmul.f32 1.442695, %v709_v24  ;;  %v1158_v24 = vld [vmem:[%s1482_s12 + $0x30] sm:$0xff] }
 0x4aa   : > { %992 = vmatpush.bf16.msrb.mxu3 %v1158_v24 }
 0x4ab   : > { %1200 = vpow2.f32 %v710_v25 }
 0x4ae   : > { %v777_v46 = vpop.permute.xlu2 %776 }
 0x4af   : > { %v650_v26 = vpop.xlane.xlu1 %649  ;;  %v782_v50 = vsel %vm606_vm5, %v777_v46, 0 }
 0x4b0   : > { %v651_v27 = vsub.f32 %v647_v20, %v650_v26  ;;  %v1151_v20 = vld [vmem:[%s1480_s10 + $0x8] sm:$0xff] }
 0x4b1   : > { %v1201_v28 = vpop.eup %1200  ;;  %v1157_v26 = vld [vmem:[%s1482_s12 + $0x28] sm:$0xff] }
 0x4b2   : > { %v652_v29 = vmul.f32 1.442695, %v651_v27  ;;  %v712_v30 = vsel %vm564_vm6, %v1201_v28, 0.0  ;;  %993 = vmatpush.bf16.msrb.mxu3 %v1157_v26  ;;  %v1156_v27 = vld [vmem:[%s1482_s12 + $0x20] sm:$0xff] }
 0x4b3   : > { %713 = vadd.xlane.f32.xlu0 %v712_v30 }
 0x4b4   : > { %1202 = vpow2.f32 %v652_v29 }
 0x4b5   : > { %1204 = vpow2.f32 %v768_v35  ;;  %v1188_v35 = vld [vmem:[%s1478_s8] ss:$0 sm:$0xff] }
 0x4b6   : > { %994 = vmatpush.bf16.msrb.mxu3 %v1156_v27 }
 0x4ba   : > { %v1203_v31 = vpop.eup %1202 }
 0x4bb   : > { %v654_v32 = vsel %vm564_vm6, %v1203_v31, 0.0  ;;  %v1205_v36 = vpop.eup %1204 }
 0x4bc   : > { %655 = vadd.xlane.f32.xlu1 %v654_v32  ;;  %v770_v37 = vsel %vm564_vm6, %v1205_v36, 0.0  ;;  %v1154_v32 = vld [vmem:[%s1482_s12 + $0x10] sm:$0xff] }
 0x4c7   : > { %718 = vrot.lane.b32.xlu0 %v1358_v38, %s1232_s17 }
 0x4d5   : > { %660 = vrot.lane.b32.xlu1 %v1358_v38, %s1233_s19 }
 0x4ff   : > { %771 = vadd.xlane.f32.xlu1 %v770_v37 }
 0x526   : > { %v714_v39 = vpop.xlane.xlu0 %713 }
 0x527   : > { %1206 = vrcp.f32 %v714_v39  ;;  %v1189_v39 = vld [vmem:[%s1479_s9] ss:$0 sm:$0xff] }
 0x52d   : > { %v1207_v40 = vpop.eup %1206 }
 0x52e   : > { %v716_v41 = vmul.f32 %v1207_v40, %v1201_v28 }
 0x52f   : > { %v656_v43 = vpop.xlane.xlu1 %655 }
 0x530   : > { %v717_v45 = vpack.c.bf16 %v716_v41, %v716_v41  ;;  %1208 = vrcp.f32 %v656_v43  ;;  %v1153_v43 = vld [vmem:[%s1482_s12 + $0x8] sm:$0xff] }
 0x536   : > { %v1209_v38 = vpop.eup %1208 }
 0x537   : > { %v658_v47 = vmul.f32 %v1209_v38, %v1203_v31 }
 0x539   : > { %v719_v42 = vpop.permute.xlu0 %718  ;;  %v659_v51 = vpack.c.bf16 %v658_v47, %v658_v47 }
 0x53a   : > { %v724_v44 = vsel %vm606_vm5, %v719_v42, 0 }
 0x53b   : > { %733 = vmatpush.bf16.msrb.mxu1 %v724_v44  ;;  %v1152_v44 = vld [vmem:[%s1482_s12] sm:$0xff] }
 0x53e   : > { %1091 = vmatmul.msk.bf16.vlgmr.msrb.gmra.mxu1 %vm564_vm6, %v717_v45  ;;  %v1190_v45 = vld [vmem:[%s1481_s11] ss:$0 sm:$0xff] }
 0x53f   : > { %914 = vmatpush.bf16.msra.mxu1 %v1151_v20 }
 0x547   : > { %v661_v48 = vpop.permute.xlu1 %660 }
 0x548   : > { %v666_v49 = vsel %vm606_vm5, %v661_v48, 0 }
 0x549   : > { %675 = vmatpush.bf16.msra.mxu2 %v666_v49 }
 0x54c   : > { %1089 = vmatmul.msk.bf16.vlgmr.msra.gmra.mxu2 %vm564_vm6, %v659_v51 }
 0x54d   : > { %791 = vmatpush.bf16.msrb.mxu2 %v782_v50  ;;  %v1191_v50 = vld [vmem:[%s1483_s13] ss:$0 sm:$0xff] }
 0x572   : > { %v772_v52 = vpop.xlane.xlu1 %771 }
 0x573   : > { %1210 = vrcp.f32 %v772_v52 }
 0x579   : > { %v1211_v53 = vpop.eup %1210 }
 0x57a   : > { %v774_v54 = vmul.f32 %v1211_v53, %v1205_v36 }
 0x57c   : > { %v775_v55 = vpack.c.bf16 %v774_v54, %v774_v54 }
 0x57e   : > { %1093 = vmatmul.msk.bf16.vlgmr.msrb.gmra.mxu2 %vm564_vm6, %v775_v55 }
 0x5bb   : > { %v735_v56 = vpop.f32.mrf.mxu1 }
 0x5bc   : > { %802 = vrot.lane.b32.xlu0 %v735_v56, %s1234_s20  ;;  %s476_s20 = scalar_lea.vmem %s1484_s14, %s1075_s15 }
 0x5c3   : > { %v737_v57 = vpop.f32.mrf.mxu1 }
 0x5cf   : > { %v677_v58 = vpop.f32.mrf.mxu2 }
 0x5d0   : > { %798 = vrot.lane.b32.xlu2 %v677_v58, %s1235_s21 }
 0x5d7   : > { %v679_v59 = vpop.f32.mrf.mxu2 }
 0x601   : > { %v793_v60 = vpop.f32.mrf.mxu2 }
 0x602   : > { %806 = vrot.lane.b32.xlu2 %v793_v60, %s1236_s22 }
 0x609   : > { %v795_v61 = vpop.f32.mrf.mxu2 }
 0x62a   : > { %v799_v0 = vpop.permute.xlu2 %798 }
 0x62b   : > { %v809_v3 = vsel %vm564_vm6, %v1385_v5, %v799_v0 }
 0x62e   : > { %v803_v2 = vpop.permute.xlu0 %802 }
 0x62f   : > { %v811_v4 = vsel %vm810_vm7, %v809_v3, %v803_v2 }
 0x65c   : > { %v807_v6 = vpop.permute.xlu2 %806 }
 0x65d   : > { %v813_v7 = vsel %vm812_vm8, %v811_v4, %v807_v6 }
 0x65e   : > { %v814_v8 = vpack.c.bf16 %v813_v7, %v813_v7 }
 0x660   : > { %1102 = vmatmul.msk.bf16.vlgmr.msra.gmra.mxu0 %vm483_vm0, %v814_v8 }
 0x6dd   : > { %v847_v11 = vpop.f32.mrf.mxu0 }
 0x6de   : > { %v848_v12 = vadd.f32 %v1187_v10, %v847_v11 }
 0x6e0   : > { %v851_v13 = vadd.f32 %v848_v12, %v1332_v1  ;;  %v1150_v1 = vld [vmem:[%s1480_s10] sm:$0xff] }
 0x6e1   : > { %915 = vmatpush.bf16.msra.mxu1 %v1150_v1 }
 0x6e2   : > { %v854_v14 = vsel %vm483_vm0, %v851_v13, 0.0 }
 0x6e3   : > { %855 = vadd.xlane.f32.xlu0 %v854_v14 }
 0x6e5   : > { %v849_v15 = vpop.f32.mrf.mxu0 }
 0x756   : > { %v856_v16 = vpop.xlane.xlu0 %855 }
 0x757   : > { %v857_v5 = vmul.f32 %v856_v16, %v1336_v9 }
 0x759   : > { %v858_v17 = vsub.f32 %v851_v13, %v857_v5 }
 0x75b   : > { %v859_v18 = vmul.f32 %v858_v17, %v858_v17 }
 0x75d   : > { %v860_v19 = vsel %vm483_vm0, %v859_v18, 0.0 }
 0x75e   : > { %861 = vadd.xlane.f32.xlu1 %v860_v19 }
 0x7d1   : > { %v862_v22 = vpop.xlane.xlu1 %861 }
 0x7d2   : > { %v863_v23 = vmul.f32 %v862_v22, %v1336_v9  ;;  %v1155_v9 = vld [vmem:[%s1482_s12 + $0x18] sm:$0xff] }
 0x7d3   : > { %995 = vmatpush.bf16.msrb.mxu3 %v1155_v9 }
 0x7d4   : > { %v864_v25 = vadd.f32 1e-05, %v863_v23 }
 0x7d6   : > { %1212 = vrsqrt.f32 %v864_v25  ;;  %vm871_vm10 = vweird.f32 %v864_v25 }
 0x7d7   : > { %996 = vmatpush.bf16.msrb.mxu3 %v1154_v32 }
 0x7db   : > { %997 = vmatpush.bf16.msrb.mxu3 %v1153_v43 }
 0x7dc   : > { %v1213_v28 = vpop.eup %1212 }
 0x7dd   : > { %v866_v29 = vmul.f32 %v1213_v28, %v864_v25  ;;  %vm872_vm9 = vweird.f32 %v1213_v28 }
 0x7de   : > { %vm873_vm11 = vmor %vm871_vm10, %vm872_vm9 }
 0x7df   : > { %v867_v30 = vmul.f32 %v1213_v28, %v866_v29  ;;  %998 = vmatpush.bf16.msrb.mxu3 %v1152_v44 }
 0x7e1   : > { %v868_v31 = vmul.f32 0.5, %v867_v30 }
 0x7e3   : > { %v869_v33 = vsub.f32 1.5, %v868_v31 }
 0x7e5   : > { %v870_v34 = vmul.f32 %v1213_v28, %v869_v33 }
 0x7e7   : > { %v874_v36 = vsel %vm873_vm11, %v1213_v28, %v870_v34 }
 0x7e8   : > { %v875_v37 = vmul.f32 %v874_v36, %v858_v17 }
 0x7ea   : > { %v879_v40 = vmul.f32 %v1188_v35, %v875_v37 }
 0x7ec   : > { %v883_v41 = vadd.f32 %v1189_v39, %v879_v40 }
 0x7ee   : > { %v884_v42 = vpack.c.bf16 %v883_v41, %v883_v41 }
 0x7f0   : > { %1111 = vmatmul.msk.bf16.vlgmr.msra.gmra.mxu1 %vm483_vm0, %v884_v42 }
 0x86d   : > { %v917_v38 = vpop.f32.mrf.mxu1 }
 0x86e   : > { %v918_v46 = vadd.f32 %v1190_v45, %v917_v38 }
 0x870   : > { %v921_v47 = vmax.f32 %v918_v46, 0.0 }
 0x872   : > { %v922_v48 = vpack.c.bf16 %v921_v47, %v921_v47 }
 0x874   : > { %999 = vmatmul.bf16.vlgmr.msrb.gmra.mxu3 %v922_v48 }
 0x875   : > { %v919_v49 = vpop.f32.mrf.mxu1 }
 0x8f7   : > { %v1000_v51 = vpop.f32.mrf.mxu3 }
 0x8f8   : > { %v1001_v52 = vadd.f32 %v1191_v50, %v1000_v51 }
 0x8fa   : > { %v1004_v53 = vadd.f32 %v1001_v52, %v851_v13 }
 0x8fc   : > { %v1005_v54 = vpack.c.bf16 %v1004_v53, %v1004_v53 }
 0x8fe   : > { %1007 = vst.msk [vmem:[%s476_s20] sm:$0xf] %vm1006_vm12, %v1005_v54 }
 0x8ff   : > { %v1002_v55 = vpop.f32.mrf.mxu3 }
 0x900 PF: > { %s24_s29 = sadd.s32 1, %s1220_s29  }
 0x901   : > { %p21_p4 = scmp.ge.s32.totalorder %s24_s29, 4  }
 0x903   :  { %23 = sbr.rel (!%p21_p4) target bundleno = 1 (0x1), region = 109 }

</bundles_post_ra>
